<compile_context>
chip_gen: v7x
topology: tpu7x:2x2x1
jax: 0.10.0
libtpu: 0.0.40
codegen_flags: <defaults>
</compile_context>

<pallas_src>
import functools

import jax
import jax.numpy as jnp
from jax import lax
from jax.experimental import pallas as pl
from jax.experimental.pallas import tpu as pltpu


def _round_up(x, m):
    return -(-x // m) * m


def _deep_speaker_kernel(x_ref,
                         w1_ref, b1_ref,
                         w2_ref, b2_ref,
                         w3_ref, b3_ref,
                         w4_ref,
                         o_ref,
                         *, num_classes):
    """Fused MLP: 3x (fc+bn folded -> sigmoid) -> padded fc4 -> masked softmax."""
    # x arrives as f32 straight from HBM; cast to bf16 in-kernel for the MXU
    # (no extra wrapper-side HBM pass over x).
    x = x_ref[...].astype(jnp.bfloat16)                       # (TB, 1024)

    h = jnp.dot(x, w1_ref[...], preferred_element_type=jnp.float32)
    h = jax.nn.sigmoid(h + b1_ref[...])                       # f32 (TB, 128)

    h = jnp.dot(h.astype(jnp.bfloat16), w2_ref[...],
                preferred_element_type=jnp.float32)
    h = jax.nn.sigmoid(h + b2_ref[...])

    h = jnp.dot(h.astype(jnp.bfloat16), w3_ref[...],
                preferred_element_type=jnp.float32)
    h = jax.nn.sigmoid(h + b3_ref[...])

    logits = jnp.dot(h.astype(jnp.bfloat16), w4_ref[...],
                     preferred_element_type=jnp.float32)      # (TB, C_pad)

    # Mask the zero-padded classifier columns so they vanish from the softmax.
    lane = lax.broadcasted_iota(jnp.int32, logits.shape, 1)
    logits = jnp.where(lane < num_classes, logits, jnp.float32(-1e30))

    m = jnp.max(logits, axis=1, keepdims=True)
    e = jnp.exp(logits - m)
    denom = jnp.sum(e, axis=1, keepdims=True)
    # Exact normalization: denom is only (TB, 1) elements, so exact division
    # is essentially free and rows sum to 1 within f32 rounding.
    o_ref[...] = (e / denom).astype(o_ref.dtype)


def _fold_bn(gamma, beta, running_mean, running_var, eps=1e-5):
    """Fold inference BatchNorm1d into per-feature (scale, bias)."""
    inv_std = 1.0 / jnp.sqrt(running_var + eps)
    scale = gamma * inv_std
    bias = beta - gamma * running_mean * inv_std
    return scale, bias


def prepare_params(raw):
    """Fold BN scale into weights, cast matmul operands to bf16, pad fc4 to a
    lane-dense width."""
    num_classes = raw["w4"].shape[1]
    c_pad = max(128, _round_up(num_classes, 128))

    def fold(w, scale):
        return (w * scale.reshape(1, -1)).astype(jnp.bfloat16)

    w4p = jnp.zeros((raw["w4"].shape[0], c_pad), jnp.float32)
    w4p = w4p.at[:, :num_classes].set(raw["w4"]).astype(jnp.bfloat16)

    return {
        "w1p": fold(raw["w1"], raw["s1"]),
        "w2p": fold(raw["w2"], raw["s2"]),
        "w3p": fold(raw["w3"], raw["s3"]),
        "w4p": w4p,
        "b1": raw["b1"].reshape(1, -1).astype(jnp.float32),
        "b2": raw["b2"].reshape(1, -1).astype(jnp.float32),
        "b3": raw["b3"].reshape(1, -1).astype(jnp.float32),
        "num_classes": num_classes,
    }


def _choose_batch_tile(B, tb_cap):
    """Batch tile: multiple of 8, <= tb_cap, and >= 2 grid steps for large B
    so the 'parallel' grid axis shards across both v7x TensorCores."""
    B8 = _round_up(B, 8)
    if B8 > tb_cap:
        return tb_cap                         # already yields >= 2 grid steps
    if B8 >= 256:
        return _round_up(-(-B8 // 2), 8)      # split into 2 parallel steps
    return B8                                 # small batch: single dense tile


def deep_speaker_forward(x, target, params, *, tb=512):
    """Equivalent of DeepSpeakerModel.forward in eval mode (softmax applied)."""
    B, in_dim = x.shape
    hidden = params["w1p"].shape[1]
    c_pad = params["w4p"].shape[1]
    num_classes = params["num_classes"]

    TB = _choose_batch_tile(B, tb)
    B_pad = _round_up(B, TB)
    if B_pad != B:
        # Only pads the (rare) ragged tail; x itself stays f32 and is cast to
        # bf16 inside the kernel.
        x = jnp.pad(x, ((0, B_pad - B), (0, 0)))

    const = lambda i: (0, 0)
    grid = (B_pad // TB,)

    # Explicit scoped-VMEM budget: double-buffered f32 x tile, double-buffered
    # f32 output tile, (double-buffered) resident bf16 weights + f32 biases,
    # plus headroom. Clamped to [32 MiB, 64 MiB] so large TB works under
    # v5e's 16 MiB scoped default and within v7x's 64 MiB physical VMEM.
    x_bytes = 2 * TB * in_dim * 4
    out_bytes = 2 * TB * c_pad * 4
    w_bytes = 2 * ((in_dim * hidden + 2 * hidden * hidden + hidden * c_pad) * 2
                   + 3 * hidden * 4)
    vmem_limit = int(min(64 * 1024 * 1024,
                         max(32 * 1024 * 1024,
                             x_bytes + out_bytes + w_bytes + (4 << 20))))

    kernel = functools.partial(_deep_speaker_kernel, num_classes=num_classes)

    out = pl.pallas_call(
        kernel,
        out_shape=jax.ShapeDtypeStruct((B_pad, c_pad), jnp.float32),
        grid_spec=pltpu.PrefetchScalarGridSpec(
            num_scalar_prefetch=0,
            grid=grid,
            in_specs=[
                pl.BlockSpec((TB, in_dim), lambda i: (i, 0)),      # x tile (f32)
                pl.BlockSpec((in_dim, hidden), const),             # w1'
                pl.BlockSpec((1, hidden), const),                  # b1
                pl.BlockSpec((hidden, hidden), const),             # w2'
                pl.BlockSpec((1, hidden), const),                  # b2
                pl.BlockSpec((hidden, hidden), const),             # w3'
                pl.BlockSpec((1, hidden), const),                  # b3
                pl.BlockSpec((hidden, c_pad), const),              # w4 (padded)
            ],
            out_specs=pl.BlockSpec((TB, c_pad), lambda i: (i, 0)),
        ),
        compiler_params=pltpu.CompilerParams(
            dimension_semantics=("parallel",),
            vmem_limit_bytes=vmem_limit,
        ),
    )(
        x.astype(jnp.float32),
        params["w1p"], params["b1"],
        params["w2p"], params["b2"],
        params["w3p"], params["b3"],
        params["w4p"],
    )
    return out[:B, :num_classes], target


def make_params(key, in_dim=1024, hidden=128, num_classes=10):
    ks = jax.random.split(key, 16)

    def lin(k, fan_in, fan_out):
        # torch.nn.Linear default init: U(-1/sqrt(fan_in), 1/sqrt(fan_in)),
        # weight stored (out, in); we pass it transposed as (in, out).
        bound = 1.0 / jnp.sqrt(fan_in)
        w = jax.random.uniform(k, (fan_out, fan_in), jnp.float32, -bound, bound)
        return w.T

    def bn(k, n):
        k1, k2, k3, k4 = jax.random.split(k, 4)
        gamma = jax.random.uniform(k1, (n,), jnp.float32, 0.5, 1.5)
        beta = jax.random.uniform(k2, (n,), jnp.float32, -0.5, 0.5)
        mean = jax.random.uniform(k3, (n,), jnp.float32, -0.1, 0.1)
        var = jax.random.uniform(k4, (n,), jnp.float32, 0.5, 1.5)
        return gamma, beta, mean, var

    params = {}
    params["w1"] = lin(ks[0], in_dim, hidden)
    params["w2"] = lin(ks[1], hidden, hidden)
    params["w3"] = lin(ks[2], hidden, hidden)
    params["w4"] = lin(ks[3], hidden, num_classes)
    params["s1"], params["b1"] = _fold_bn(*bn(ks[4], hidden))
    params["s2"], params["b2"] = _fold_bn(*bn(ks[5], hidden))
    params["s3"], params["b3"] = _fold_bn(*bn(ks[6], hidden))
    # DDK parameters (unused; kept for shape parity with the PyTorch module)
    params["alpha"] = jax.random.uniform(ks[7], (32,), jnp.float32, 0.1, 1.0)
    params["beta_ddk"] = jax.random.uniform(ks[8], (32,), jnp.float32, 0.1, 1.0)
    return params


def reference_forward(x, prepped):
    """Pure-JAX reference using the same bf16 operands and f32 accumulation."""
    xb = x.astype(jnp.bfloat16)
    h = jax.nn.sigmoid(
        jnp.dot(xb, prepped["w1p"], preferred_element_type=jnp.float32)
        + prepped["b1"])
    h = jax.nn.sigmoid(
        jnp.dot(h.astype(jnp.bfloat16), prepped["w2p"],
                preferred_element_type=jnp.float32) + prepped["b2"])
    h = jax.nn.sigmoid(
        jnp.dot(h.astype(jnp.bfloat16), prepped["w3p"],
                preferred_element_type=jnp.float32) + prepped["b3"])
    logits = jnp.dot(h.astype(jnp.bfloat16),
                     prepped["w4p"][:, :prepped["num_classes"]],
                     preferred_element_type=jnp.float32)
    return jax.nn.softmax(logits, axis=1)


if __name__ == "__main__":
    key = jax.random.PRNGKey(0)
    k_x, k_t, k_p = jax.random.split(key, 3)

    B, IN_DIM, HIDDEN, NUM_CLASSES = 8, 1024, 128, 10
    x = jax.random.normal(k_x, (B, IN_DIM), jnp.float32)
    target = jax.random.randint(k_t, (B,), 0, NUM_CLASSES)

    raw = make_params(k_p, IN_DIM, HIDDEN, NUM_CLASSES)
    params = prepare_params(raw)

    out, tgt = deep_speaker_forward(x, target, params)
    out = jax.block_until_ready(out)

    ref = reference_forward(x, params)
    assert out.shape == (B, NUM_CLASSES), out.shape
    # bf16 MXU operands -> slightly relaxed tolerance vs pure-f32.
    assert jnp.allclose(out, ref, atol=5e-3, rtol=5e-3), "mismatch vs reference"
    # exact softmax normalization: rows sum to 1 within f32 rounding.
    assert jnp.allclose(jnp.sum(out, axis=1), 1.0, atol=1e-4)
    assert jnp.all(tgt == target)

    print("KERNEL_OK")
</pallas_src>

<mosaic_0001>
module attributes {stable_mosaic.version = 11 : i64} {
  func.func @_deep_speaker_kernel(%arg0: i32, %arg1: memref<8x1024xf32, #tpu.memory_space<vmem>>, %arg2: memref<1024x128xbf16, #tpu.memory_space<vmem>>, %arg3: memref<1x128xf32, #tpu.memory_space<vmem>>, %arg4: memref<128x128xbf16, #tpu.memory_space<vmem>>, %arg5: memref<1x128xf32, #tpu.memory_space<vmem>>, %arg6: memref<128x128xbf16, #tpu.memory_space<vmem>>, %arg7: memref<1x128xf32, #tpu.memory_space<vmem>>, %arg8: memref<128x128xbf16, #tpu.memory_space<vmem>>, %arg9: memref<8x128xf32, #tpu.memory_space<vmem>>) attributes {dimension_semantics = [#tpu.dimension_semantics<parallel>], iteration_bounds = array<i64: 1>, scalar_prefetch = 0 : i64, scratch_operands = 0 : i64, tpu.core_type = #tpu.core_type<tc>, window_params = [{transform_indices = @transform_0, window_bounds = array<i64: 8, 1024>}, {pipeline_mode = #tpu.pipeline_mode<synchronous>, transform_indices = @transform_1, window_bounds = array<i64: 1024, 128>}, {pipeline_mode = #tpu.pipeline_mode<synchronous>, transform_indices = @transform_2, window_bounds = array<i64: 1, 128>}, {pipeline_mode = #tpu.pipeline_mode<synchronous>, transform_indices = @transform_3, window_bounds = array<i64: 128, 128>}, {pipeline_mode = #tpu.pipeline_mode<synchronous>, transform_indices = @transform_4, window_bounds = array<i64: 1, 128>}, {pipeline_mode = #tpu.pipeline_mode<synchronous>, transform_indices = @transform_5, window_bounds = array<i64: 128, 128>}, {pipeline_mode = #tpu.pipeline_mode<synchronous>, transform_indices = @transform_6, window_bounds = array<i64: 1, 128>}, {pipeline_mode = #tpu.pipeline_mode<synchronous>, transform_indices = @transform_7, window_bounds = array<i64: 128, 128>}, {transform_indices = @transform_8, window_bounds = array<i64: 8, 128>}]} {
    %c0 = arith.constant 0 : index
    %c0_0 = arith.constant 0 : index
    %0 = vector.load %arg1[%c0, %c0_0] : memref<8x1024xf32, #tpu.memory_space<vmem>>, vector<8x1024xf32>
    %1 = arith.truncf %0 : vector<8x1024xf32> to vector<8x1024xbf16>
    %c0_1 = arith.constant 0 : index
    %c0_2 = arith.constant 0 : index
    %2 = vector.load %arg2[%c0_1, %c0_2] : memref<1024x128xbf16, #tpu.memory_space<vmem>>, vector<1024x128xbf16>
    %cst = arith.constant dense<0.000000e+00> : vector<8x128xf32>
    %3 = tpu.matmul %1, %2, %cst {dimension_numbers = #tpu.dot_dimension_numbers<[1], [0], [0], [1], [0, 0, 1, 1], [], []>} : vector<8x1024xbf16>, vector<1024x128xbf16>, vector<8x128xf32> -> vector<8x128xf32>
    %c0_3 = arith.constant 0 : index
    %c0_4 = arith.constant 0 : index
    %4 = vector.load %arg3[%c0_3, %c0_4] : memref<1x128xf32, #tpu.memory_space<vmem>>, vector<1x128xf32>
    %5 = vector.broadcast %4 : vector<1x128xf32> to vector<8x128xf32>
    %6 = arith.addf %3, %5 : vector<8x128xf32>
    %7 = arith.negf %6 : vector<8x128xf32>
    %8 = math.exp %7 : vector<8x128xf32>
    %cst_5 = arith.constant 1.000000e+00 : f32
    %9 = vector.broadcast %cst_5 : f32 to vector<8x128xf32>
    %10 = arith.addf %9, %8 : vector<8x128xf32>
    %11 = arith.divf %9, %10 : vector<8x128xf32>
    %12 = arith.truncf %11 : vector<8x128xf32> to vector<8x128xbf16>
    %c0_6 = arith.constant 0 : index
    %c0_7 = arith.constant 0 : index
    %13 = vector.load %arg4[%c0_6, %c0_7] : memref<128x128xbf16, #tpu.memory_space<vmem>>, vector<128x128xbf16>
    %cst_8 = arith.constant dense<0.000000e+00> : vector<8x128xf32>
    %14 = tpu.matmul %12, %13, %cst_8 {dimension_numbers = #tpu.dot_dimension_numbers<[1], [0], [0], [1], [0, 0, 1, 1], [], []>} : vector<8x128xbf16>, vector<128x128xbf16>, vector<8x128xf32> -> vector<8x128xf32>
    %c0_9 = arith.constant 0 : index
    %c0_10 = arith.constant 0 : index
    %15 = vector.load %arg5[%c0_9, %c0_10] : memref<1x128xf32, #tpu.memory_space<vmem>>, vector<1x128xf32>
    %16 = vector.broadcast %15 : vector<1x128xf32> to vector<8x128xf32>
    %17 = arith.addf %14, %16 : vector<8x128xf32>
    %18 = arith.negf %17 : vector<8x128xf32>
    %19 = math.exp %18 : vector<8x128xf32>
    %cst_11 = arith.constant 1.000000e+00 : f32
    %20 = vector.broadcast %cst_11 : f32 to vector<8x128xf32>
    %21 = arith.addf %20, %19 : vector<8x128xf32>
    %22 = arith.divf %20, %21 : vector<8x128xf32>
    %23 = arith.truncf %22 : vector<8x128xf32> to vector<8x128xbf16>
    %c0_12 = arith.constant 0 : index
    %c0_13 = arith.constant 0 : index
    %24 = vector.load %arg6[%c0_12, %c0_13] : memref<128x128xbf16, #tpu.memory_space<vmem>>, vector<128x128xbf16>
    %cst_14 = arith.constant dense<0.000000e+00> : vector<8x128xf32>
    %25 = tpu.matmul %23, %24, %cst_14 {dimension_numbers = #tpu.dot_dimension_numbers<[1], [0], [0], [1], [0, 0, 1, 1], [], []>} : vector<8x128xbf16>, vector<128x128xbf16>, vector<8x128xf32> -> vector<8x128xf32>
    %c0_15 = arith.constant 0 : index
    %c0_16 = arith.constant 0 : index
    %26 = vector.load %arg7[%c0_15, %c0_16] : memref<1x128xf32, #tpu.memory_space<vmem>>, vector<1x128xf32>
    %27 = vector.broadcast %26 : vector<1x128xf32> to vector<8x128xf32>
    %28 = arith.addf %25, %27 : vector<8x128xf32>
    %29 = arith.negf %28 : vector<8x128xf32>
    %30 = math.exp %29 : vector<8x128xf32>
    %cst_17 = arith.constant 1.000000e+00 : f32
    %31 = vector.broadcast %cst_17 : f32 to vector<8x128xf32>
    %32 = arith.addf %31, %30 : vector<8x128xf32>
    %33 = arith.divf %31, %32 : vector<8x128xf32>
    %34 = arith.truncf %33 : vector<8x128xf32> to vector<8x128xbf16>
    %c0_18 = arith.constant 0 : index
    %c0_19 = arith.constant 0 : index
    %35 = vector.load %arg8[%c0_18, %c0_19] : memref<128x128xbf16, #tpu.memory_space<vmem>>, vector<128x128xbf16>
    %cst_20 = arith.constant dense<0.000000e+00> : vector<8x128xf32>
    %36 = tpu.matmul %34, %35, %cst_20 {dimension_numbers = #tpu.dot_dimension_numbers<[1], [0], [0], [1], [0, 0, 1, 1], [], []>} : vector<8x128xbf16>, vector<128x128xbf16>, vector<8x128xf32> -> vector<8x128xf32>
    %37 = tpu.iota {dimensions = array<i32: 1>} : vector<8x128xi32>
    %c10_i32 = arith.constant 10 : i32
    %38 = vector.broadcast %c10_i32 : i32 to vector<8x128xi32>
    %39 = arith.cmpi slt, %37, %38 : vector<8x128xi32>
    %cst_21 = arith.constant -1.000000e+30 : f32
    %40 = vector.broadcast %cst_21 : f32 to vector<8x128xf32>
    %41 = arith.select %39, %36, %40 : vector<8x128xi1>, vector<8x128xf32>
    %cst_22 = arith.constant dense<0xFF800000> : vector<8xf32>
    %42 = vector.multi_reduction <maximumf>, %41, %cst_22 [1] : vector<8x128xf32> to vector<8xf32>
    %43 = vector.shape_cast %42 : vector<8xf32> to vector<8x1xf32>
    %44 = vector.broadcast %43 : vector<8x1xf32> to vector<8x128xf32>
    %45 = arith.subf %41, %44 : vector<8x128xf32>
    %46 = math.exp %45 : vector<8x128xf32>
    %cst_23 = arith.constant dense<0.000000e+00> : vector<8xf32>
    %47 = vector.multi_reduction <add>, %46, %cst_23 [1] : vector<8x128xf32> to vector<8xf32>
    %48 = vector.shape_cast %47 : vector<8xf32> to vector<8x1xf32>
    %49 = vector.broadcast %48 : vector<8x1xf32> to vector<8x128xf32>
    %50 = arith.divf %46, %49 : vector<8x128xf32>
    %c0_24 = arith.constant 0 : index
    %c0_25 = arith.constant 0 : index
    %51 = vector.load %arg9[%c0_24, %c0_25] : memref<8x128xf32, #tpu.memory_space<vmem>>, vector<8x128xf32>
    tpu.vector_store %arg9[%c0_24, %c0_25], %50 {strides = array<i32>} : memref<8x128xf32, #tpu.memory_space<vmem>>, vector<8x128xf32>,
    return
  }
  func.func @transform_0(%arg0: i32) -> (i32, i32) {
    %c0_i32 = arith.constant 0 : i32
    %c0_i32_0 = arith.constant 0 : i32
    return %arg0, %c0_i32 : i32, i32
  }
  func.func @transform_1(%arg0: i32) -> (i32, i32) {
    %c0_i32 = arith.constant 0 : i32
    %c0_i32_0 = arith.constant 0 : i32
    %c0_i32_1 = arith.constant 0 : i32
    return %c0_i32, %c0_i32_0 : i32, i32
  }
  func.func @transform_2(%arg0: i32) -> (i32, i32) {
    %c0_i32 = arith.constant 0 : i32
    %c0_i32_0 = arith.constant 0 : i32
    %c0_i32_1 = arith.constant 0 : i32
    return %c0_i32, %c0_i32_0 : i32, i32
  }
  func.func @transform_3(%arg0: i32) -> (i32, i32) {
    %c0_i32 = arith.constant 0 : i32
    %c0_i32_0 = arith.constant 0 : i32
    %c0_i32_1 = arith.constant 0 : i32
    return %c0_i32, %c0_i32_0 : i32, i32
  }
  func.func @transform_4(%arg0: i32) -> (i32, i32) {
    %c0_i32 = arith.constant 0 : i32
    %c0_i32_0 = arith.constant 0 : i32
    %c0_i32_1 = arith.constant 0 : i32
    return %c0_i32, %c0_i32_0 : i32, i32
  }
  func.func @transform_5(%arg0: i32) -> (i32, i32) {
    %c0_i32 = arith.constant 0 : i32
    %c0_i32_0 = arith.constant 0 : i32
    %c0_i32_1 = arith.constant 0 : i32
    return %c0_i32, %c0_i32_0 : i32, i32
  }
  func.func @transform_6(%arg0: i32) -> (i32, i32) {
    %c0_i32 = arith.constant 0 : i32
    %c0_i32_0 = arith.constant 0 : i32
    %c0_i32_1 = arith.constant 0 : i32
    return %c0_i32, %c0_i32_0 : i32, i32
  }
  func.func @transform_7(%arg0: i32) -> (i32, i32) {
    %c0_i32 = arith.constant 0 : i32
    %c0_i32_0 = arith.constant 0 : i32
    %c0_i32_1 = arith.constant 0 : i32
    return %c0_i32, %c0_i32_0 : i32, i32
  }
  func.func @transform_8(%arg0: i32) -> (i32, i32) {
    %c0_i32 = arith.constant 0 : i32
    %c0_i32_0 = arith.constant 0 : i32
    return %arg0, %c0_i32 : i32, i32
  }
}

</mosaic_0001>

<bundles_post_ra>
// kernel: tpu_custom_call.1
= control target key start
LH: loop header
LB: loop body
LE: loop exit
PB: predicated region body
PF: predicated region fallthrough
CT: control target
= control target key end

     0   :  { %13 = vsyncpa [#allocation3], 0  ;;  %s1871_s0 = inlined_call_operand.hbm [shape: f32[8,1024], index: 0, kind: input, shape index: {}]   ;;  %s1872_s1 = inlined_call_operand.hbm [shape: bf16[1024,128], index: 1, kind: input, shape index: {}]   ;;  %s1873_s2 = inlined_call_operand.vmem [shape: f32[1,128], index: 2, kind: input, shape index: {}]   ;;  %s1874_s3 = inlined_call_operand.hbm [shape: bf16[128,128], index: 3, kind: input, shape index: {}]   ;;  %s1875_s4 = inlined_call_operand.vmem [shape: f32[1,128], index: 4, kind: input, shape index: {}]   ;;  %s1876_s5 = inlined_call_operand.hbm [shape: bf16[128,128], index: 5, kind: input, shape index: {}]   ;;  %s1877_s6 = inlined_call_operand.vmem [shape: f32[1,128], index: 6, kind: input, shape index: {}]   ;;  %s1878_s7 = inlined_call_operand.hbm [shape: bf16[128,128], index: 7, kind: input, shape index: {}]   ;;  %s1879_s8 = inlined_call_operand.hbm [shape: f32[8,128], index: 8, kind: output, shape index: {}]  }
   0x1   :  { %14 = vsyncpa [#allocation6], 0 }
   0x2   :  { %15 = vsyncpa [#allocation9], 0 }
   0x3   :  { %16 = vsyncpa [#allocation4], 0  ;;  %s1693_s27 = smov [#allocation5]   ;;  %s1553_s9 = scalar_lea.hbm %s1872_s1, 8192 }
   0x4   :  { %s32_s28 = sshll.u32 %s1693_s27, 4  ;;  %p1554_p0 = scmp.ne.s32.totalorder %s1872_s1, %s1553_s9  ;;  %s33_s28 = int_to_ptr.vmem [resolvable:$true] %s32_s28 }
   0x5   :  { %p1557_p1 = scmp.lt.u32.totalorder %s1553_s9, %s1872_s1 }
   0x7   :  { %p1559_p2 = pnand %p1557_p1, %p1554_p0 }
   0x9   :  { %1562 = shalt.err (!%p1559_p2)
}
   0xa   :  { %s1563_s14 = scalar_lea.vmem %s33_s28, 8192  ;;  %p1568_p4 = scmp.lt.s32.totalorder %s33_s28, %s33_s28 }
   0xb   :  { %p1564_p3 = scmp.ne.s32.totalorder %s33_s28, %s1563_s14  ;;  %p1569_p5 = scmp.lt.s32.totalorder %s1563_s14, %s1563_s14 }
   0xd   :  { %p1570_p6 = por %p1569_p5, %p1568_p4 }
   0xf   :  { %p1571_p7 = pnand %p1570_p6, %p1564_p3 }
  0x11   :  { %1574 = shalt.err (!%p1571_p7)
}
  0x12   :  { %s1694_s15 = smov 64   ;;  %s1695_s16 = smov 4  }
  0x13   :  { %38 = dma.hbm_to_vmem [thread:$0]  %s1872_s1, 8192, %s33_s28, [#allocation6], %s1694_s15, %s1694_s15, %s1695_s16  }
  0x14   :  { %s1696_s19 = smov [#allocation8]   ;;  %s1697_s21 = smov [#allocation2]  }
  0x15   :  { %s60_s20 = sshll.u32 %s1696_s19, 4  ;;  %s23_s22 = sshll.u32 %s1697_s21, 4  ;;  %s61_s20 = int_to_ptr.vmem [resolvable:$true] %s60_s20  ;;  %s24_s22 = int_to_ptr.vmem [resolvable:$true] %s23_s22 }
  0x16   :  { %s1575_s25 = scalar_lea.hbm %s1876_s5, 1024 }
  0x17   :  { %p1576_p8 = scmp.ne.s32.totalorder %s1876_s5, %s1575_s25  ;;  %p1579_p9 = scmp.lt.u32.totalorder %s1575_s25, %s1876_s5 }
  0x19   :  { %p1581_p10 = pnand %p1579_p9, %p1576_p8 }
  0x1b   :  { %1584 = shalt.err (!%p1581_p10)
}
  0x1c   :  { %s1585_s1 = scalar_lea.vmem %s61_s20, 1024  ;;  %p1590_p12 = scmp.lt.s32.totalorder %s61_s20, %s61_s20 }
  0x1d   :  { %p1586_p11 = scmp.ne.s32.totalorder %s61_s20, %s1585_s1  ;;  %p1591_p13 = scmp.lt.s32.totalorder %s1585_s1, %s1585_s1 }
  0x1f   :  { %p1592_p0 = por %p1591_p13, %p1590_p12 }
  0x21   :  { %p1593_p1 = pnand %p1592_p0, %p1586_p11 }
  0x23   :  { %1596 = shalt.err (!%p1593_p1)
}
  0x24   :  { %66 = dma.hbm_to_vmem [thread:$0]  %s1876_s5, 1024, %s61_s20, [#allocation9], %s1694_s15, %s1694_s15, %s1695_s16  }
  0x25   :  { %s1597_s12 = scalar_lea.hbm %s1871_s0, 1024 }
  0x26   :  { %p1598_p2 = scmp.ne.s32.totalorder %s1871_s0, %s1597_s12  ;;  %p1601_p3 = scmp.lt.u32.totalorder %s1597_s12, %s1871_s0 }
  0x28   :  { %p1603_p4 = pnand %p1601_p3, %p1598_p2 }
  0x2a   :  { %1606 = shalt.err (!%p1603_p4)
}
  0x2b   :  { %s1607_s19 = scalar_lea.vmem %s24_s22, 1024  ;;  %p1612_p6 = scmp.lt.s32.totalorder %s24_s22, %s24_s22 }
  0x2c   :  { %p1608_p5 = scmp.ne.s32.totalorder %s24_s22, %s1607_s19  ;;  %p1613_p7 = scmp.lt.s32.totalorder %s1607_s19, %s1607_s19 }
  0x2e   :  { %p1614_p8 = por %p1613_p7, %p1612_p6 }
  0x30   :  { %p1615_p9 = pnand %p1614_p8, %p1608_p5 }
  0x32   :  { %1618 = shalt.err (!%p1615_p9)
}
  0x33   :  { %26 = dma.hbm_to_vmem [thread:$0]  %s1871_s0, 1024, %s24_s22, [#allocation3]  }
  0x34   :  { %s1698_s21 = smov [#allocation7]   ;;  %s1699_s24 = smov [#allocation10]  }
  0x35   :  { %s46_s23 = sshll.u32 %s1698_s21, 4  ;;  %s74_s25 = sshll.u32 %s1699_s24, 4  ;;  %s47_s23 = int_to_ptr.vmem [resolvable:$true] %s46_s23  ;;  %s75_s25 = int_to_ptr.vmem [resolvable:$true] %s74_s25 }
  0x36   :  { %s1619_s29 = scalar_lea.hbm %s1874_s3, 1024 }
  0x37   :  { %p1620_p10 = scmp.ne.s32.totalorder %s1874_s3, %s1619_s29  ;;  %p1623_p11 = scmp.lt.u32.totalorder %s1619_s29, %s1874_s3 }
  0x39   :  { %p1625_p12 = pnand %p1623_p11, %p1620_p10 }
  0x3b   :  { %1628 = shalt.err (!%p1625_p12)
}
  0x3c   :  { %s1629_s0 = scalar_lea.vmem %s47_s23, 1024  ;;  %p1634_p0 = scmp.lt.s32.totalorder %s47_s23, %s47_s23 }
  0x3d   :  { %p1630_p13 = scmp.ne.s32.totalorder %s47_s23, %s1629_s0  ;;  %p1635_p1 = scmp.lt.s32.totalorder %s1629_s0, %s1629_s0 }
  0x3f   :  { %p1636_p2 = por %p1635_p1, %p1634_p0 }
  0x41   :  { %p1637_p3 = pnand %p1636_p2, %p1630_p13 }
  0x43   :  { %1640 = shalt.err (!%p1637_p3)
}
  0x44   :  { %52 = dma.hbm_to_vmem [thread:$0]  %s1874_s3, 1024, %s47_s23, [#allocation6], %s1694_s15, %s1694_s15, %s1695_s16  }
  0x45   :  { %s1641_s13 = scalar_lea.hbm %s1878_s7, 1024 }
  0x46   :  { %p1642_p4 = scmp.ne.s32.totalorder %s1878_s7, %s1641_s13  ;;  %p1645_p5 = scmp.lt.u32.totalorder %s1641_s13, %s1878_s7 }
  0x48   :  { %p1647_p6 = pnand %p1645_p5, %p1642_p4 }
  0x4a   :  { %1650 = shalt.err (!%p1647_p6)
}
  0x4b   :  { %s1651_s5 = scalar_lea.vmem %s75_s25, 1024  ;;  %p1656_p8 = scmp.lt.s32.totalorder %s75_s25, %s75_s25 }
  0x4c   :  { %p1652_p7 = scmp.ne.s32.totalorder %s75_s25, %s1651_s5  ;;  %p1657_p9 = scmp.lt.s32.totalorder %s1651_s5, %s1651_s5 }
  0x4e   :  { %p1658_p10 = por %p1657_p9, %p1656_p8 }
  0x50   :  { %p1659_p11 = pnand %p1658_p10, %p1652_p7 }
  0x52   :  { %1662 = shalt.err (!%p1659_p11)
}
  0x53   :  { %80 = dma.hbm_to_vmem [thread:$0]  %s1878_s7, 1024, %s75_s25, [#allocation9], %s1694_s15, %s1694_s15, %s1695_s16  }
  0x54   :  { %1685 = dma.done.wait [#allocation3], 1024  }
  0x55   :  { %1686 = vsyncadd [#allocation3], 4294966272 }
  0x56   :  { %1687 = dma.done.wait [#allocation6], 9216  }
  0x57   :  { %1688 = vsyncadd [#allocation6], 4294958080 }
  0x58   :  { %1689 = dma.done.wait [#allocation9], 2048  }
  0x59   :  { %1690 = vsyncadd [#allocation9], 4294965248  ;;  %v1449_v0 = vld [vmem:[#allocation5 + $0x40] sm:$0xff]   ;;  %v1453_v4 = vld [vmem:[#allocation5 + $0x48] sm:$0xff]   ;;  %vm1701_vm0 = vmmov 0  }
  0x5a   :  { %v1450_v1 = vld [vmem:[#allocation5 + $0xc0] sm:$0xff]   ;;  %1264 = vmatprep.subr.bf16.mxu0 %v1449_v0  ;;  %v1454_v5 = vld [vmem:[#allocation5 + $0xc8] sm:$0xff]   ;;  %v1457_v8 = vld [vmem:[#allocation5 + $0x50] sm:$0xff]  }
  0x5b   :  { %v1451_v2 = vld [vmem:[#allocation5] sm:$0xff]   ;;  %1286 = vmatprep.subr.bf16.mxu1 %v1450_v1  ;;  %v1455_v6 = vld [vmem:[#allocation5 + $0x8] sm:$0xff]   ;;  %v1458_v9 = vld [vmem:[#allocation5 + $0xd0] sm:$0xff]  }
  0x5c   :  { %v1452_v3 = vld [vmem:[#allocation5 + $0x80] sm:$0xff]   ;;  %1265 = vmatpush3.bf16.msra.mxu0 %v1451_v2  ;;  %v1456_v7 = vld [vmem:[#allocation5 + $0x88] sm:$0xff]   ;;  %v1459_v10 = vld [vmem:[#allocation5 + $0x10] sm:$0xff]  }
  0x5d   :  { %1287 = vmatpush3.bf16.msra.mxu1 %v1452_v3  ;;  %1266 = vmatprep.subr.bf16.mxu0 %v1453_v4  ;;  %v1460_v11 = vld [vmem:[#allocation5 + $0x90] sm:$0xff]   ;;  %v1461_v12 = vld [vmem:[#allocation5 + $0x58] sm:$0xff]   ;;  %v1465_v16 = vld [vmem:[#allocation5 + $0x60] sm:$0xff]  }
  0x5e   :  { %1288 = vmatprep.subr.bf16.mxu1 %v1454_v5  ;;  %v1462_v13 = vld [vmem:[#allocation5 + $0xd8] sm:$0xff]   ;;  %v1466_v17 = vld [vmem:[#allocation5 + $0xe0] sm:$0xff]   ;;  %v1469_v20 = vld [vmem:[#allocation5 + $0x68] sm:$0xff]  }
  0x5f   :  { %v1463_v14 = vld [vmem:[#allocation5 + $0x18] sm:$0xff]   ;;  %v1467_v18 = vld [vmem:[#allocation5 + $0x20] sm:$0xff]   ;;  %v1470_v21 = vld [vmem:[#allocation5 + $0xe8] sm:$0xff]  }
  0x60   :  { %1267 = vmatpush3.bf16.msra.mxu0 %v1455_v6  ;;  %v1464_v15 = vld [vmem:[#allocation5 + $0x98] sm:$0xff]   ;;  %v1468_v19 = vld [vmem:[#allocation5 + $0xa0] sm:$0xff]   ;;  %v1471_v22 = vld [vmem:[#allocation5 + $0x28] sm:$0xff]  }
  0x61   :  { %1289 = vmatpush3.bf16.msra.mxu1 %v1456_v7  ;;  %1268 = vmatprep.subr.bf16.mxu0 %v1457_v8  ;;  %v1472_v23 = vld [vmem:[#allocation5 + $0xa8] sm:$0xff]   ;;  %v1473_v24 = vld [vmem:[#allocation5 + $0x70] sm:$0xff]   ;;  %v1477_v28 = vld [vmem:[#allocation5 + $0x78] sm:$0xff]  }
  0x62   :  { %1290 = vmatprep.subr.bf16.mxu1 %v1458_v9  ;;  %v1474_v25 = vld [vmem:[#allocation5 + $0xf0] sm:$0xff]   ;;  %v1478_v29 = vld [vmem:[#allocation5 + $0xf8] sm:$0xff]   ;;  %v98_v32 = vld [vmem:[#allocation2 + $0x8] sm:$0xff] }
  0x63   :  { %v1475_v26 = vld [vmem:[#allocation5 + $0x30] sm:$0xff]   ;;  %v1479_v30 = vld [vmem:[#allocation5 + $0x38] sm:$0xff]   ;;  %v97_v34 = vld [vmem:[#allocation2] sm:$0xff]  ;;  %v106_v35 = vpack.c.bf16 %v98_v32, %v98_v32 }
  0x64   :  { %1269 = vmatpush3.bf16.msra.mxu0 %v1459_v10  ;;  %v1476_v27 = vld [vmem:[#allocation5 + $0xb0] sm:$0xff]   ;;  %v1480_v31 = vld [vmem:[#allocation5 + $0xb8] sm:$0xff]   ;;  %v105_v37 = vpack.c.bf16 %v97_v34, %v97_v34  ;;  %v1481_v40 = vld [vmem:[#allocation5 + $0x140] sm:$0xff]  }
  0x65   :  { %1291 = vmatpush3.bf16.msra.mxu1 %v1460_v11  ;;  %1270 = vmatprep.subr.bf16.mxu0 %v1461_v12  ;;  %v100_v33 = vld [vmem:[#allocation2 + $0x18] sm:$0xff]  ;;  %v99_v38 = vld [vmem:[#allocation2 + $0x10] sm:$0xff]  ;;  %v1482_v41 = vld [vmem:[#allocation5 + $0x1c0] sm:$0xff]  }
  0x66   :  { %1292 = vmatprep.subr.bf16.mxu1 %v1462_v13  ;;  %v108_v36 = vpack.c.bf16 %v100_v33, %v100_v33  ;;  %v107_v39 = vpack.c.bf16 %v99_v38, %v99_v38  ;;  %664 = vmatprep.mubr.bf16.mxu0 %v106_v35  ;;  %v1483_v42 = vld [vmem:[#allocation5 + $0x100] sm:$0xff]   ;;  %v1485_v44 = vld [vmem:[#allocation5 + $0x148] sm:$0xff]   ;;  %v1489_v48 = vld [vmem:[#allocation5 + $0x150] sm:$0xff]  }
  0x67   :  { %v1484_v43 = vld [vmem:[#allocation5 + $0x180] sm:$0xff]   ;;  %v1486_v45 = vld [vmem:[#allocation5 + $0x1c8] sm:$0xff]   ;;  %v1490_v49 = vld [vmem:[#allocation5 + $0x1d0] sm:$0xff]  }
  0x68   :  { %1271 = vmatpush3.bf16.msra.mxu0 %v1463_v14  ;;  %704 = vmatprep.mubr.bf16.mxu1 %v108_v36  ;;  %v1487_v46 = vld [vmem:[#allocation5 + $0x108] sm:$0xff]   ;;  %v1491_v50 = vld [vmem:[#allocation5 + $0x110] sm:$0xff]   ;;  %v1493_v52 = vld [vmem:[#allocation5 + $0x158] sm:$0xff]  }
  0x69   :  { %1293 = vmatpush3.bf16.msra.mxu1 %v1464_v15  ;;  %1272 = vmatprep.subr.bf16.mxu0 %v1465_v16  ;;  %v1488_v47 = vld [vmem:[#allocation5 + $0x188] sm:$0xff]   ;;  %v1492_v51 = vld [vmem:[#allocation5 + $0x190] sm:$0xff]   ;;  %v1494_v53 = vld [vmem:[#allocation5 + $0x1d8] sm:$0xff]  }
  0x6a   :  { %1294 = vmatprep.subr.bf16.mxu1 %v1466_v17  ;;  %v1495_v54 = vld [vmem:[#allocation5 + $0x118] sm:$0xff]   ;;  %v1497_v56 = vld [vmem:[#allocation5 + $0x160] sm:$0xff]   ;;  %v1501_v60 = vld [vmem:[#allocation5 + $0x168] sm:$0xff]   ;;  %v1700_v17 = vmov 0.0  }
  0x6b   :  { %v1496_v55 = vld [vmem:[#allocation5 + $0x198] sm:$0xff]   ;;  %v1498_v57 = vld [vmem:[#allocation5 + $0x1e0] sm:$0xff]   ;;  %v1502_v61 = vld [vmem:[#allocation5 + $0x1e8] sm:$0xff]  }
  0x6c   :  { %1273 = vmatpush3.bf16.msra.mxu0 %v1467_v18  ;;  %v1499_v58 = vld [vmem:[#allocation5 + $0x120] sm:$0xff]   ;;  %v1503_v62 = vld [vmem:[#allocation5 + $0x128] sm:$0xff]   ;;  %v1505_v0 = vld [vmem:[#allocation5 + $0x170] sm:$0xff]  }
  0x6d   :  { %1295 = vmatpush3.bf16.msra.mxu1 %v1468_v19  ;;  %1274 = vmatprep.subr.bf16.mxu0 %v1469_v20  ;;  %v1500_v59 = vld [vmem:[#allocation5 + $0x1a0] sm:$0xff]   ;;  %v1504_v63 = vld [vmem:[#allocation5 + $0x1a8] sm:$0xff]   ;;  %v1506_v1 = vld [vmem:[#allocation5 + $0x1f0] sm:$0xff]  }
  0x6e   :  { %1296 = vmatprep.subr.bf16.mxu1 %v1470_v21  ;;  %v1507_v2 = vld [vmem:[#allocation5 + $0x130] sm:$0xff]   ;;  %v1509_v4 = vld [vmem:[#allocation5 + $0x178] sm:$0xff]   ;;  %v102_v8 = vld [vmem:[#allocation2 + $0x28] sm:$0xff] }
  0x6f   :  { %v1508_v3 = vld [vmem:[#allocation5 + $0x1b0] sm:$0xff]   ;;  %v1510_v5 = vld [vmem:[#allocation5 + $0x1f8] sm:$0xff]   ;;  %v110_v10 = vpack.c.bf16 %v102_v8, %v102_v8  ;;  %v101_v12 = vld [vmem:[#allocation2 + $0x20] sm:$0xff] }
  0x70   :  { %1275 = vmatpush3.bf16.msra.mxu0 %v1471_v22  ;;  %v1511_v6 = vld [vmem:[#allocation5 + $0x138] sm:$0xff]   ;;  %v103_v13 = vld [vmem:[#allocation2 + $0x30] sm:$0xff]  ;;  %v109_v14 = vpack.c.bf16 %v101_v12, %v101_v12  ;;  %v1513_v16 = vld [vmem:[#allocation7] sm:$0xff]  }
  0x71   :  { %1297 = vmatpush3.bf16.msra.mxu1 %v1472_v23  ;;  %1276 = vmatprep.subr.bf16.mxu0 %v1473_v24  ;;  %v1512_v7 = vld [vmem:[#allocation5 + $0x1b8] sm:$0xff]   ;;  %v111_v15 = vpack.c.bf16 %v103_v13, %v103_v13  ;;  %v1514_v18 = vld [vmem:[#allocation7 + $0x8] sm:$0xff]   ;;  %v1515_v19 = vld [vmem:[#allocation7 + $0x10] sm:$0xff]  }
  0x72   :  { %1298 = vmatprep.subr.bf16.mxu1 %v1474_v25  ;;  %v104_v9 = vld [vmem:[#allocation2 + $0x38] sm:$0xff]  ;;  %v1517_v21 = vld [vmem:[#allocation7 + $0x20] sm:$0xff]   ;;  %v1518_v22 = vld [vmem:[#allocation7 + $0x28] sm:$0xff]  }
  0x73   :  { %v112_v11 = vpack.c.bf16 %v104_v9, %v104_v9  ;;  %v1516_v20 = vld [vmem:[#allocation7 + $0x18] sm:$0xff]   ;;  %v1519_v23 = vld [vmem:[#allocation7 + $0x30] sm:$0xff]  }
  0x74   :  { %1277 = vmatpush3.bf16.msra.mxu0 %v1475_v26  ;;  %v1520_v24 = vld [vmem:[#allocation7 + $0x38] sm:$0xff]   ;;  %v1531_v12 = vld [vmem:[#allocation10 + $0x10] sm:$0xff]  }
  0x75   :  { %1299 = vmatpush3.bf16.msra.mxu1 %v1476_v27  ;;  %1278 = vmatprep.subr.bf16.mxu0 %v1477_v28  ;;  %v1170_v27 = vld [vmem:[%s1873_s2] ss:$0 sm:$0xff]  ;;  %v1532_v13 = vld [vmem:[#allocation10 + $0x18] sm:$0xff]  }
  0x76   :  { %1300 = vmatprep.subr.bf16.mxu1 %v1478_v29 }
  0x78   :  { %1279 = vmatpush3.bf16.msra.mxu0 %v1479_v30 }
  0x79   :  { %1301 = vmatpush3.bf16.msra.mxu1 %v1480_v31  ;;  %1308 = vmatprep.subr.bf16.mxu0 %v1481_v40 }
  0x7a   :  { %1330 = vmatprep.subr.bf16.mxu1 %v1482_v41 }
  0x7b   :  { %665 = vmatmul.mubr.bf16.vlgmr.msra.gmra.mrb[0].mxu0 %v105_v37 }
  0x7c   :  { %705 = vmatmul.mubr.bf16.vlgmr.msra.gmra.mrb[0].mxu1 %v107_v39  ;;  %1309 = vmatpush3.bf16.msra.mxu0 %v1483_v42 }
  0x7d   :  { %1331 = vmatpush3.bf16.msra.mxu1 %v1484_v43  ;;  %1310 = vmatprep.subr.bf16.mxu0 %v1485_v44 }
  0x7e   :  { %1332 = vmatprep.subr.bf16.mxu1 %v1486_v45  ;;  %744 = vmatprep.mubr.bf16.mxu0 %v110_v10  ;;  %v1529_v10 = vld [vmem:[#allocation10] sm:$0xff]  }
  0x7f   :  { %784 = vmatprep.mubr.bf16.mxu1 %v112_v11  ;;  %v1530_v11 = vld [vmem:[#allocation10 + $0x8] sm:$0xff]  }
  0x80   :  { %1311 = vmatpush3.bf16.msra.mxu0 %v1487_v46 }
  0x81   :  { %1333 = vmatpush3.bf16.msra.mxu1 %v1488_v47  ;;  %1312 = vmatprep.subr.bf16.mxu0 %v1489_v48 }
  0x82   :  { %1334 = vmatprep.subr.bf16.mxu1 %v1490_v49 }
  0x84   :  { %1313 = vmatpush3.bf16.msra.mxu0 %v1491_v50 }
  0x85   :  { %1335 = vmatpush3.bf16.msra.mxu1 %v1492_v51  ;;  %1314 = vmatprep.subr.bf16.mxu0 %v1493_v52 }
  0x86   :  { %1336 = vmatprep.subr.bf16.mxu1 %v1494_v53 }
  0x88   :  { %1315 = vmatpush3.bf16.msra.mxu0 %v1495_v54 }
  0x89   :  { %1337 = vmatpush3.bf16.msra.mxu1 %v1496_v55  ;;  %1316 = vmatprep.subr.bf16.mxu0 %v1497_v56  ;;  %v1521_v55 = vld [vmem:[#allocation8] sm:$0xff]   ;;  %v1522_v56 = vld [vmem:[#allocation8 + $0x8] sm:$0xff]  }
  0x8a   :  { %1338 = vmatprep.subr.bf16.mxu1 %v1498_v57  ;;  %v1523_v57 = vld [vmem:[#allocation8 + $0x10] sm:$0xff]  }
  0x8c   :  { %1317 = vmatpush3.bf16.msra.mxu0 %v1499_v58  ;;  %v1524_v58 = vld [vmem:[#allocation8 + $0x18] sm:$0xff]  }
  0x8d   :  { %1339 = vmatpush3.bf16.msra.mxu1 %v1500_v59  ;;  %1318 = vmatprep.subr.bf16.mxu0 %v1501_v60  ;;  %v1525_v59 = vld [vmem:[#allocation8 + $0x20] sm:$0xff]   ;;  %v1526_v60 = vld [vmem:[#allocation8 + $0x28] sm:$0xff]  }
  0x8e   :  { %1340 = vmatprep.subr.bf16.mxu1 %v1502_v61  ;;  %v1527_v61 = vld [vmem:[#allocation8 + $0x30] sm:$0xff]  }
  0x90   :  { %1319 = vmatpush3.bf16.msra.mxu0 %v1503_v62  ;;  %v1528_v62 = vld [vmem:[#allocation8 + $0x38] sm:$0xff]  }
  0x91   :  { %1341 = vmatpush3.bf16.msra.mxu1 %v1504_v63  ;;  %1320 = vmatprep.subr.bf16.mxu0 %v1505_v0  ;;  %v1236_v63 = vld [vmem:[%s1875_s4] ss:$0 sm:$0xff] }
  0x92   :  { %1342 = vmatprep.subr.bf16.mxu1 %v1506_v1 }
  0x94   :  { %1321 = vmatpush3.bf16.msra.mxu0 %v1507_v2 }
  0x95   :  { %1343 = vmatpush3.bf16.msra.mxu1 %v1508_v3  ;;  %1322 = vmatprep.subr.bf16.mxu0 %v1509_v4 }
  0x96   :  { %1344 = vmatprep.subr.bf16.mxu1 %v1510_v5 }
  0x98   :  { %1323 = vmatpush3.bf16.msra.mxu0 %v1511_v6 }
  0x99   :  { %1345 = vmatpush3.bf16.msra.mxu1 %v1512_v7  ;;  %1379 = vmatprep.subr.bf16.mxu0 %v1700_v17 }
  0x9a   :  { %1399 = vmatprep.subr.bf16.mxu1 %v1700_v17 }
  0x9b   :  { %745 = vmatmul.mubr.bf16.vlgmr.msra.gmra.mrb[4].mxu0 %v109_v14  ;;  %v1533_v14 = vld [vmem:[#allocation10 + $0x20] sm:$0xff]  }
  0x9c   :  { %785 = vmatmul.mubr.bf16.vlgmr.msra.gmra.mrb[4].mxu1 %v111_v15  ;;  %1380 = vmatpush3.bf16.msra.mxu0 %v1513_v16  ;;  %v1534_v15 = vld [vmem:[#allocation10 + $0x28] sm:$0xff]   ;;  %v1535_v16 = vld [vmem:[#allocation10 + $0x30] sm:$0xff]  }
  0x9d   :  { %1381 = vmatprep.subr.bf16.mxu0 %v1700_v17  ;;  %1395 = vmatprep.mubr.msk.bf16.mxu0 %vm1701_vm0, %v1700_v17 }
  0x9e   :  { %1415 = vmatprep.mubr.msk.bf16.mxu1 %vm1701_vm0, %v1700_v17  ;;  %1400 = vmatpush3.bf16.msra.mxu1 %v1521_v55 }
  0x9f   :  { %1401 = vmatprep.subr.bf16.mxu1 %v1700_v17 }
  0xa0   :  { %1382 = vmatpush3.bf16.msra.mxu0 %v1514_v18  ;;  %v1536_v18 = vld [vmem:[#allocation10 + $0x38] sm:$0xff]  }
  0xa1   :  { %1383 = vmatprep.subr.bf16.mxu0 %v1700_v17 }
  0xa2   :  { %1402 = vmatpush3.bf16.msra.mxu1 %v1522_v56 }
  0xa3   :  { %1403 = vmatprep.subr.bf16.mxu1 %v1700_v17 }
  0xa4   :  { %1384 = vmatpush3.bf16.msra.mxu0 %v1515_v19  ;;  %v1246_v19 = vld [vmem:[%s1877_s6] ss:$0 sm:$0xff]  ;;  %s1702_s6 = smov [#allocation11]  }
  0xa5   :  { %1385 = vmatprep.subr.bf16.mxu0 %v1700_v17  ;;  %s1159_s23 = sshll.u32 %s1702_s6, 4  ;;  %s1160_s23 = int_to_ptr.vmem [resolvable:$true] %s1159_s23 }
  0xa6   :  { %1404 = vmatpush3.bf16.msra.mxu1 %v1523_v57  ;;  %s1663_s24 = scalar_lea.vmem %s1160_s23, 128  ;;  %p1668_p13 = scmp.lt.s32.totalorder %s1160_s23, %s1160_s23 }
  0xa7   :  { %1405 = vmatprep.subr.bf16.mxu1 %v1700_v17  ;;  %p1664_p12 = scmp.ne.s32.totalorder %s1160_s23, %s1663_s24  ;;  %p1669_p0 = scmp.lt.s32.totalorder %s1663_s24, %s1663_s24 }
  0xa8   :  { %1386 = vmatpush3.bf16.msra.mxu0 %v1516_v20 }
  0xa9   :  { %1387 = vmatprep.subr.bf16.mxu0 %v1700_v17  ;;  %p1670_p1 = por %p1669_p0, %p1668_p13 }
  0xaa   :  { %1406 = vmatpush3.bf16.msra.mxu1 %v1524_v58 }
  0xab   :  { %1407 = vmatprep.subr.bf16.mxu1 %v1700_v17  ;;  %p1671_p2 = pnand %p1670_p1, %p1664_p12 }
  0xac   :  { %1388 = vmatpush3.bf16.msra.mxu0 %v1517_v21 }
  0xad   :  { %1389 = vmatprep.subr.bf16.mxu0 %v1700_v17 }
  0xae   :  { %1408 = vmatpush3.bf16.msra.mxu1 %v1525_v59 }
  0xaf   :  { %1409 = vmatprep.subr.bf16.mxu1 %v1700_v17 }
  0xb0   :  { %1390 = vmatpush3.bf16.msra.mxu0 %v1518_v22 }
  0xb1   :  { %1391 = vmatprep.subr.bf16.mxu0 %v1700_v17 }
  0xb2   :  { %1410 = vmatpush3.bf16.msra.mxu1 %v1526_v60 }
  0xb3   :  { %1411 = vmatprep.subr.bf16.mxu1 %v1700_v17 }
  0xb4   :  { %1392 = vmatpush3.bf16.msra.mxu0 %v1519_v23 }
  0xb5   :  { %1393 = vmatprep.subr.bf16.mxu0 %v1700_v17 }
  0xb6   :  { %1412 = vmatpush3.bf16.msra.mxu1 %v1527_v61 }
  0xb7   :  { %1413 = vmatprep.subr.bf16.mxu1 %v1700_v17 }
  0xb8   :  { %1394 = vmatpush3.bf16.msra.mxu0 %v1520_v24 }
  0xb9   :  { %1419 = vmatprep.subr.bf16.mxu0 %v1700_v17 }
  0xba   :  { %1414 = vmatpush3.bf16.msra.mxu1 %v1528_v62 }
 0x14e   :  { %v1280_v25 = vpop.f32.mrb[0].mxu0 }
 0x14f   :  { %v1302_v26 = vpop.f32.mrb[0].mxu1  ;;  %v1281_v28 = vpop.f32.mrb[1].mxu0 }
 0x150   :  { %v1303_v29 = vpop.f32.mrb[1].mxu1  ;;  %v1282_v30 = vadd.f32 %v1281_v28, %v1280_v25  ;;  %v1283_v32 = vpop.f32.mrb[2].mxu0 }
 0x151   :  { %v1304_v31 = vadd.f32 %v1303_v29, %v1302_v26  ;;  %v1305_v33 = vpop.f32.mrb[2].mxu1  ;;  %v1284_v34 = vpop.f32.mrb[3].mxu0 }
 0x152   :  { %v1306_v35 = vpop.f32.mrb[3].mxu1  ;;  %v667_v36 = vadd.f32 %v1282_v30, %v1170_v27  ;;  %v1139_v30 = vlaneseq }
 0x154   :  { %v707_v37 = vadd.f32 %v1304_v31, %v667_v36 }
 0x16e   :  { %v1324_v38 = vpop.f32.mrb[4].mxu0 }
 0x16f   :  { %v1346_v39 = vpop.f32.mrb[4].mxu1  ;;  %v1325_v40 = vpop.f32.mrb[5].mxu0 }
 0x170   :  { %v1326_v41 = vadd.f32 %v1325_v40, %v1324_v38  ;;  %v1347_v42 = vpop.f32.mrb[5].mxu1  ;;  %v1327_v43 = vpop.f32.mrb[6].mxu0 }
 0x171   :  { %v1348_v44 = vadd.f32 %v1347_v42, %v1346_v39  ;;  %v1349_v45 = vpop.f32.mrb[6].mxu1  ;;  %v1328_v46 = vpop.f32.mrb[7].mxu0 }
 0x172   :  { %v747_v47 = vadd.f32 %v1326_v41, %v707_v37  ;;  %v1350_v48 = vpop.f32.mrb[7].mxu1 }
 0x174   :  { %v787_v49 = vadd.f32 %v1348_v44, %v747_v47 }
 0x176   :  { %v1235_v50 = vmul.f32 -1.442695, %v787_v49 }
 0x178   :  { %1537 = vpow2.f32 %v1235_v50 }
 0x182   :  { %v1538_v51 = vpop.eup %1537 }
 0x183   :  { %v795_v52 = vadd.f32 1.0, %v1538_v51 }
 0x185   :  { %1539 = vrcp.f32 %v795_v52 }
 0x18f   :  { %v1540_v53 = vpop.eup %1539 }
 0x190   :  { %v798_v54 = vpack.c.bf16 %v1540_v53, %v1540_v53 }
 0x192   :  { %1396 = vmatmul.mubr.bf16.vlgmr.msra.gmra.mrb[8].mxu0 %v798_v54 }
 0x193   :  { %1435 = vmatprep.mubr.msk.bf16.mxu0 %vm1701_vm0, %v1700_v17  ;;  %1420 = vmatpush3.bf16.msra.mxu0 %v1529_v10 }
 0x194   :  { %1421 = vmatprep.subr.bf16.mxu0 %v1700_v17 }
 0x197   :  { %1422 = vmatpush3.bf16.msra.mxu0 %v1530_v11 }
 0x198   :  { %1423 = vmatprep.subr.bf16.mxu0 %v1700_v17 }
 0x19b   :  { %1424 = vmatpush3.bf16.msra.mxu0 %v1531_v12 }
 0x19c   :  { %1425 = vmatprep.subr.bf16.mxu0 %v1700_v17 }
 0x19f   :  { %1426 = vmatpush3.bf16.msra.mxu0 %v1532_v13 }
 0x1a0   :  { %1427 = vmatprep.subr.bf16.mxu0 %v1700_v17 }
 0x1a3   :  { %1428 = vmatpush3.bf16.msra.mxu0 %v1533_v14 }
 0x1a4   :  { %1429 = vmatprep.subr.bf16.mxu0 %v1700_v17 }
 0x1a7   :  { %1430 = vmatpush3.bf16.msra.mxu0 %v1534_v15 }
 0x1a8   :  { %1431 = vmatprep.subr.bf16.mxu0 %v1700_v17 }
 0x1ab   :  { %1432 = vmatpush3.bf16.msra.mxu0 %v1535_v16 }
 0x1ac   :  { %1433 = vmatprep.subr.bf16.mxu0 %v1700_v17  ;;  %v1140_v17 = vand.u32 127, %v1139_v30 }
 0x1ae   :  { %vm1141_vm1 = vcmp.lt.s32.totalorder %v1140_v17, 10 }
 0x1af   :  { %1434 = vmatpush3.bf16.msra.mxu0 %v1536_v18 }
 0x265   :  { %v904_v0 = vpop.f32.mrb[8].mxu0 }
 0x266   :  { %v905_v1 = vadd.f32 %v1236_v63, %v904_v0  ;;  %v1397_v2 = vpop.f32.mrb[9].mxu0 }
 0x267   :  { %v907_v3 = vpop.f32.mrb[10].mxu0 }
 0x268   :  { %v1245_v4 = vmul.f32 -1.442695, %v905_v1  ;;  %v1398_v5 = vpop.f32.mrb[11].mxu0 }
 0x26a   :  { %1541 = vpow2.f32 %v1245_v4 }
 0x274   :  { %v1542_v6 = vpop.eup %1541 }
 0x275   :  { %v913_v7 = vadd.f32 1.0, %v1542_v6 }
 0x277   :  { %1543 = vrcp.f32 %v913_v7 }
 0x281   :  { %v1544_v8 = vpop.eup %1543 }
 0x282   :  { %v916_v9 = vpack.c.bf16 %v1544_v8, %v1544_v8 }
 0x284   :  { %1416 = vmatmul.mubr.bf16.vlgmr.msra.gmra.mrb[8].mxu1 %v916_v9 }
 0x357   :  { %v1022_v20 = vpop.f32.mrb[8].mxu1 }
 0x358   :  { %v1023_v21 = vadd.f32 %v1246_v19, %v1022_v20  ;;  %v1417_v22 = vpop.f32.mrb[9].mxu1 }
 0x359   :  { %v1025_v23 = vpop.f32.mrb[10].mxu1 }
 0x35a   :  { %v1255_v24 = vmul.f32 -1.442695, %v1023_v21  ;;  %v1418_v25 = vpop.f32.mrb[11].mxu1 }
 0x35c   :  { %1545 = vpow2.f32 %v1255_v24 }
 0x366   :  { %v1546_v26 = vpop.eup %1545 }
 0x367   :  { %v1031_v27 = vadd.f32 1.0, %v1546_v26 }
 0x369   :  { %1547 = vrcp.f32 %v1031_v27 }
 0x373   :  { %v1548_v28 = vpop.eup %1547 }
 0x374   :  { %v1034_v29 = vpack.c.bf16 %v1548_v28, %v1548_v28 }
 0x376   :  { %1436 = vmatmul.mubr.bf16.vlgmr.msra.gmra.mrb[12].mxu0 %v1034_v29 }
 0x449   :  { %v1133_v31 = vpop.f32.mrb[12].mxu0 }
 0x44a   :  { %v1437_v32 = vpop.f32.mrb[13].mxu0  ;;  %v1142_v33 = vsel %vm1141_vm1, %v1133_v31, -1e+30 }
 0x44b   :  { %1143 = vmax.xlane.f32.xlu0 %v1142_v33  ;;  %v1136_v34 = vpop.f32.mrb[14].mxu0 }
 0x44c   :  { %v1438_v35 = vpop.f32.mrb[15].mxu0 }
 0x4d8   :  { %v1144_v36 = vpop.xlane.xlu0 %1143 }
 0x4d9   :  { %v1145_v37 = vsub.f32 %v1142_v33, %v1144_v36 }
 0x4db   :  { %v1146_v38 = vmul.f32 1.442695, %v1145_v37 }
 0x4dd   :  { %1549 = vpow2.f32 %v1146_v38 }
 0x4e7   :  { %v1550_v39 = vpop.eup %1549 }
 0x4e8   :  { %1148 = vadd.xlane.f32.xlu0 %v1550_v39 }
 0x575   :  { %v1149_v40 = vpop.xlane.xlu0 %1148 }
 0x576   :  { %1551 = vrcp.f32 %v1149_v40 }
 0x580   :  { %v1552_v41 = vpop.eup %1551 }
 0x581   :  { %v1151_v42 = vmul.f32 %v1552_v41, %v1550_v39 }
 0x583   :  { %1152 = vst [vmem:[#allocation11] sm:$0xff] %v1151_v42 }
 0x584   :  { %1674 = shalt.err (!%p1671_p2)
}
 0x585   :  { %s1675_s27 = scalar_lea.hbm %s1879_s8, 128 }
 0x586   :  { %p1676_p3 = scmp.ne.s32.totalorder %s1879_s8, %s1675_s27  ;;  %p1679_p4 = scmp.lt.u32.totalorder %s1675_s27, %s1879_s8 }
 0x588   :  { %p1681_p5 = pnand %p1679_p4, %p1676_p3 }
 0x58a   :  { %1684 = shalt.err (!%p1681_p5)
}
 0x58b   :  { %1162 = dma.vmem_to_hbm [thread:$0]  %s1160_s23, 128, %s1879_s8, [#allocation4]  }
 0x58c   :  { %1691 = dma.done.wait [#allocation4], 128  }
 0x58d   :  { %1692 = vsyncadd [#allocation4], 4294967168 }
 0x58e   :  { %1166 = vsyncpa [#allocation3], 1 }
 0x58f   :  { %1167 = vsyncpa [#allocation6], 1 }
 0x590   :  { %1168 = vsyncpa [#allocation9], 1 }
 0x591   :  { %1169 = vsyncpa [#allocation4], 1 }

</bundles_post_ra>
